<compile_context>
chip_gen: v6e
topology: v6e:2x2x1
jax: 0.10.0
libtpu: 0.0.40
codegen_flags: <defaults>
</compile_context>

<pallas_src>
import jax
import jax.numpy as jnp
from jax.experimental import pallas as pl
from jax.experimental.pallas import tpu as pltpu

STATE_DIM = 10    # Config.state_dim
HIDDEN = 256      # Config.hidden_size
ACTION_DIM = 3    # Config.action_dim
OUT_PAD = 128     # lane-dense padded output width


def bc_kernel(x_ref, w1_ref, b1_ref, w2_ref, b2_ref, w3_ref, b3_ref, out_ref):
    x = x_ref[...].astype(jnp.bfloat16)                                   # cast in-kernel
    h = jnp.dot(x, w1_ref[...], preferred_element_type=jnp.float32) + b1_ref[...]
    h = jnp.maximum(h, 0.0).astype(jnp.bfloat16)                          # bf16 for next MXU pass
    h = jnp.dot(h, w2_ref[...], preferred_element_type=jnp.float32) + b2_ref[...]
    h = jnp.maximum(h, 0.0).astype(jnp.bfloat16)
    y = jnp.dot(h, w3_ref[...], preferred_element_type=jnp.float32) + b3_ref[...]
    out_ref[...] = y.astype(jnp.bfloat16)                                 # bf16 writeback


def init_linear(key, fan_in, fan_out):
    """PyTorch nn.Linear default init: U(-1/sqrt(fan_in), 1/sqrt(fan_in)).
    Weight returned as [in, out] (transposed for x @ W)."""
    kw, kb = jax.random.split(key)
    bound = 1.0 / jnp.sqrt(jnp.float32(fan_in))
    w = jax.random.uniform(kw, (fan_in, fan_out), jnp.float32, -bound, bound)
    b = jax.random.uniform(kb, (1, fan_out), jnp.float32, -bound, bound)
    return w, b


def init_bc_params(key):
    """Float32 reference parameters: (w1, b1, w2, b2, w3, b3)."""
    keys = jax.random.split(key, 3)
    w1, b1 = init_linear(keys[0], STATE_DIM, HIDDEN)
    w2, b2 = init_linear(keys[1], HIDDEN, HIDDEN)
    w3, b3 = init_linear(keys[2], HIDDEN, ACTION_DIM)
    return (w1, b1, w2, b2, w3, b3)


def prepare_kernel_params(params_f32, out_pad=OUT_PAD):
    """bf16 MXU weights, f32 biases; last layer zero-padded to a lane-dense width."""
    w1, b1, w2, b2, w3, b3 = params_f32
    w3p = jnp.zeros((w3.shape[0], out_pad), jnp.float32).at[:, :ACTION_DIM].set(w3)
    b3p = jnp.zeros((1, out_pad), jnp.float32).at[:, :ACTION_DIM].set(b3)
    return (w1.astype(jnp.bfloat16), b1,
            w2.astype(jnp.bfloat16), b2,
            w3p.astype(jnp.bfloat16), b3p)


def _bc_forward(x, kparams, *, tb=1024):
    """BehaviorCloningNet forward. x: [B, STATE_DIM] float32 -> logits [B, ACTION_DIM] f32.

    tb is the batch tile (tunable; sweep for large batches). It is capped at the
    128-rounded batch so tiny batches run as a single small tile instead of padding
    all the way up to tb.
    """
    B = x.shape[0]
    tile = max(128, min(tb, ((B + 127) // 128) * 128))
    Bp = ((B + tile - 1) // tile) * tile
    if Bp != B:
        x = jnp.pad(x, ((0, Bp - B), (0, 0)))
    grid = (Bp // tile,)

    in_specs = (
        [pl.BlockSpec((tile, STATE_DIM), lambda i: (i, 0))]
        + [pl.BlockSpec(p.shape, lambda i: (0, 0)) for p in kparams]
    )
    out_specs = pl.BlockSpec((tile, OUT_PAD), lambda i: (i, 0))
    out = pl.pallas_call(
        bc_kernel,
        grid=grid,
        in_specs=in_specs,
        out_specs=out_specs,
        out_shape=jax.ShapeDtypeStruct((Bp, OUT_PAD), jnp.bfloat16),
        compiler_params=pltpu.CompilerParams(dimension_semantics=("parallel",)),
    )(x, *kparams)
    # Slice off batch padding and the zero-padded action columns; restore f32 API dtype.
    return out[:B, :ACTION_DIM].astype(jnp.float32)


bc_forward = jax.jit(_bc_forward, static_argnames=("tb",))


def bc_forward_ref(x, params_f32):
    """Plain-JAX float32 reference for verification."""
    w1, b1, w2, b2, w3, b3 = params_f32
    h = jnp.maximum(x @ w1 + b1, 0.0)
    h = jnp.maximum(h @ w2 + b2, 0.0)
    return h @ w3 + b3


if __name__ == "__main__":
    key = jax.random.PRNGKey(0)
    kx, kp = jax.random.split(key)

    B = 16  # small demo batch; capped tile -> single 128-row grid step
    x = jax.random.normal(kx, (B, STATE_DIM), dtype=jnp.float32)

    params_f32 = init_bc_params(kp)
    kparams = prepare_kernel_params(params_f32)

    logits = bc_forward(x, kparams)
    logits = jax.block_until_ready(logits)

    logits_ref = bc_forward_ref(x, params_f32)
    assert logits.shape == (B, ACTION_DIM)
    # bf16 MXU operands + bf16 output store vs f32 reference -> loose-but-safe tolerance
    assert jnp.allclose(logits, logits_ref, atol=5e-2, rtol=5e-2)

    print("KERNEL_OK")
</pallas_src>

<mosaic_0001>
module attributes {stable_mosaic.version = 11 : i64} {
  func.func @bc_kernel(%arg0: i32, %arg1: memref<128x10xf32, #tpu.memory_space<vmem>>, %arg2: memref<10x256xbf16, #tpu.memory_space<vmem>>, %arg3: memref<1x256xf32, #tpu.memory_space<vmem>>, %arg4: memref<256x256xbf16, #tpu.memory_space<vmem>>, %arg5: memref<1x256xf32, #tpu.memory_space<vmem>>, %arg6: memref<256x128xbf16, #tpu.memory_space<vmem>>, %arg7: memref<1x128xf32, #tpu.memory_space<vmem>>, %arg8: memref<128x128xbf16, #tpu.memory_space<vmem>>) attributes {dimension_semantics = [#tpu.dimension_semantics<parallel>], iteration_bounds = array<i64: 1>, scalar_prefetch = 0 : i64, scratch_operands = 0 : i64, tpu.core_type = #tpu.core_type<tc>, window_params = [{transform_indices = @transform_0, window_bounds = array<i64: 128, 10>}, {pipeline_mode = #tpu.pipeline_mode<synchronous>, transform_indices = @transform_1, window_bounds = array<i64: 10, 256>}, {pipeline_mode = #tpu.pipeline_mode<synchronous>, transform_indices = @transform_2, window_bounds = array<i64: 1, 256>}, {pipeline_mode = #tpu.pipeline_mode<synchronous>, transform_indices = @transform_3, window_bounds = array<i64: 256, 256>}, {pipeline_mode = #tpu.pipeline_mode<synchronous>, transform_indices = @transform_4, window_bounds = array<i64: 1, 256>}, {pipeline_mode = #tpu.pipeline_mode<synchronous>, transform_indices = @transform_5, window_bounds = array<i64: 256, 128>}, {pipeline_mode = #tpu.pipeline_mode<synchronous>, transform_indices = @transform_6, window_bounds = array<i64: 1, 128>}, {transform_indices = @transform_7, window_bounds = array<i64: 128, 128>}]} {
    %c0 = arith.constant 0 : index
    %c0_0 = arith.constant 0 : index
    %0 = vector.load %arg1[%c0, %c0_0] : memref<128x10xf32, #tpu.memory_space<vmem>>, vector<128x10xf32>
    %1 = arith.truncf %0 : vector<128x10xf32> to vector<128x10xbf16>
    %c0_1 = arith.constant 0 : index
    %c0_2 = arith.constant 0 : index
    %2 = vector.load %arg2[%c0_1, %c0_2] : memref<10x256xbf16, #tpu.memory_space<vmem>>, vector<10x256xbf16>
    %cst = arith.constant dense<0.000000e+00> : vector<128x256xf32>
    %3 = tpu.matmul %1, %2, %cst {dimension_numbers = #tpu.dot_dimension_numbers<[1], [0], [0], [1], [0, 0, 1, 1], [], []>} : vector<128x10xbf16>, vector<10x256xbf16>, vector<128x256xf32> -> vector<128x256xf32>
    %c0_3 = arith.constant 0 : index
    %c0_4 = arith.constant 0 : index
    %4 = vector.load %arg3[%c0_3, %c0_4] : memref<1x256xf32, #tpu.memory_space<vmem>>, vector<1x256xf32>
    %5 = vector.broadcast %4 : vector<1x256xf32> to vector<128x256xf32>
    %6 = arith.addf %3, %5 : vector<128x256xf32>
    %cst_5 = arith.constant 0.000000e+00 : f32
    %7 = vector.broadcast %cst_5 : f32 to vector<128x256xf32>
    %8 = arith.maximumf %6, %7 : vector<128x256xf32>
    %9 = arith.truncf %8 : vector<128x256xf32> to vector<128x256xbf16>
    %c0_6 = arith.constant 0 : index
    %c0_7 = arith.constant 0 : index
    %10 = vector.load %arg4[%c0_6, %c0_7] : memref<256x256xbf16, #tpu.memory_space<vmem>>, vector<256x256xbf16>
    %cst_8 = arith.constant dense<0.000000e+00> : vector<128x256xf32>
    %11 = tpu.matmul %9, %10, %cst_8 {dimension_numbers = #tpu.dot_dimension_numbers<[1], [0], [0], [1], [0, 0, 1, 1], [], []>} : vector<128x256xbf16>, vector<256x256xbf16>, vector<128x256xf32> -> vector<128x256xf32>
    %c0_9 = arith.constant 0 : index
    %c0_10 = arith.constant 0 : index
    %12 = vector.load %arg5[%c0_9, %c0_10] : memref<1x256xf32, #tpu.memory_space<vmem>>, vector<1x256xf32>
    %13 = vector.broadcast %12 : vector<1x256xf32> to vector<128x256xf32>
    %14 = arith.addf %11, %13 : vector<128x256xf32>
    %cst_11 = arith.constant 0.000000e+00 : f32
    %15 = vector.broadcast %cst_11 : f32 to vector<128x256xf32>
    %16 = arith.maximumf %14, %15 : vector<128x256xf32>
    %17 = arith.truncf %16 : vector<128x256xf32> to vector<128x256xbf16>
    %c0_12 = arith.constant 0 : index
    %c0_13 = arith.constant 0 : index
    %18 = vector.load %arg6[%c0_12, %c0_13] : memref<256x128xbf16, #tpu.memory_space<vmem>>, vector<256x128xbf16>
    %cst_14 = arith.constant dense<0.000000e+00> : vector<128x128xf32>
    %19 = tpu.matmul %17, %18, %cst_14 {dimension_numbers = #tpu.dot_dimension_numbers<[1], [0], [0], [1], [0, 0, 1, 1], [], []>} : vector<128x256xbf16>, vector<256x128xbf16>, vector<128x128xf32> -> vector<128x128xf32>
    %c0_15 = arith.constant 0 : index
    %c0_16 = arith.constant 0 : index
    %20 = vector.load %arg7[%c0_15, %c0_16] : memref<1x128xf32, #tpu.memory_space<vmem>>, vector<1x128xf32>
    %21 = vector.broadcast %20 : vector<1x128xf32> to vector<128x128xf32>
    %22 = arith.addf %19, %21 : vector<128x128xf32>
    %23 = arith.truncf %22 : vector<128x128xf32> to vector<128x128xbf16>
    %c0_17 = arith.constant 0 : index
    %c0_18 = arith.constant 0 : index
    %24 = vector.load %arg8[%c0_17, %c0_18] : memref<128x128xbf16, #tpu.memory_space<vmem>>, vector<128x128xbf16>
    tpu.vector_store %arg8[%c0_17, %c0_18], %23 {strides = array<i32>} : memref<128x128xbf16, #tpu.memory_space<vmem>>, vector<128x128xbf16>,
    return
  }
  func.func @transform_0(%arg0: i32) -> (i32, i32) {
    %c0_i32 = arith.constant 0 : i32
    %c0_i32_0 = arith.constant 0 : i32
    return %arg0, %c0_i32 : i32, i32
  }
  func.func @transform_1(%arg0: i32) -> (i32, i32) {
    %c0_i32 = arith.constant 0 : i32
    %c0_i32_0 = arith.constant 0 : i32
    %c0_i32_1 = arith.constant 0 : i32
    return %c0_i32, %c0_i32_0 : i32, i32
  }
  func.func @transform_2(%arg0: i32) -> (i32, i32) {
    %c0_i32 = arith.constant 0 : i32
    %c0_i32_0 = arith.constant 0 : i32
    %c0_i32_1 = arith.constant 0 : i32
    return %c0_i32, %c0_i32_0 : i32, i32
  }
  func.func @transform_3(%arg0: i32) -> (i32, i32) {
    %c0_i32 = arith.constant 0 : i32
    %c0_i32_0 = arith.constant 0 : i32
    %c0_i32_1 = arith.constant 0 : i32
    return %c0_i32, %c0_i32_0 : i32, i32
  }
  func.func @transform_4(%arg0: i32) -> (i32, i32) {
    %c0_i32 = arith.constant 0 : i32
    %c0_i32_0 = arith.constant 0 : i32
    %c0_i32_1 = arith.constant 0 : i32
    return %c0_i32, %c0_i32_0 : i32, i32
  }
  func.func @transform_5(%arg0: i32) -> (i32, i32) {
    %c0_i32 = arith.constant 0 : i32
    %c0_i32_0 = arith.constant 0 : i32
    %c0_i32_1 = arith.constant 0 : i32
    return %c0_i32, %c0_i32_0 : i32, i32
  }
  func.func @transform_6(%arg0: i32) -> (i32, i32) {
    %c0_i32 = arith.constant 0 : i32
    %c0_i32_0 = arith.constant 0 : i32
    %c0_i32_1 = arith.constant 0 : i32
    return %c0_i32, %c0_i32_0 : i32, i32
  }
  func.func @transform_7(%arg0: i32) -> (i32, i32) {
    %c0_i32 = arith.constant 0 : i32
    %c0_i32_0 = arith.constant 0 : i32
    return %arg0, %c0_i32 : i32, i32
  }
}

</mosaic_0001>

<bundles_post_ra>
// kernel: _bc_forward.1
= control target key start
LH: loop header
LB: loop body
LE: loop exit
PB: predicated region body
PF: predicated region fallthrough
CT: control target
= control target key end

     0   :  { %12 = vsyncpa [#allocation3], 0  ;;  %s1258_s24 = smov [#allocation2]   ;;  %s1558_s0 = inlined_call_operand.vmem [shape: f32[128,10], index: 0, kind: input, shape index: {}]   ;;  %s1559_s1 = inlined_call_operand.vmem [shape: bf16[10,256], index: 1, kind: input, shape index: {}]   ;;  %s1560_s2 = inlined_call_operand.vmem [shape: f32[1,256], index: 2, kind: input, shape index: {}]   ;;  %s1561_s3 = inlined_call_operand.hbm [shape: bf16[256,256], index: 3, kind: input, shape index: {}]   ;;  %s1562_s4 = inlined_call_operand.vmem [shape: f32[1,256], index: 4, kind: input, shape index: {}]   ;;  %s1563_s5 = inlined_call_operand.vmem [shape: bf16[256,128], index: 5, kind: input, shape index: {}]   ;;  %s1564_s6 = inlined_call_operand.vmem [shape: f32[1,128], index: 6, kind: input, shape index: {}]   ;;  %s1565_s7 = inlined_call_operand.vmem [shape: bf16[128,128], index: 7, kind: output, shape index: {}]  }
   0x1   :  { %s24_s25 = sshll.u32 %s1258_s24, 4  ;;  %s25_s25 = int_to_ptr.vmem [resolvable:$true] %s24_s25 }
   0x2   :  { %s1244_s26 = scalar_lea.vmem %s25_s25, 4096  ;;  %p1249_p1 = scmp.lt.s32.totalorder %s25_s25, %s25_s25 }
   0x3   :  { %p1245_p0 = scmp.ne.s32.totalorder %s25_s25, %s1244_s26  ;;  %p1250_p2 = scmp.lt.s32.totalorder %s1244_s26, %s1244_s26 }
   0x5   :  { %p1251_p3 = por %p1250_p2, %p1249_p1 }
   0x7   :  { %p1252_p4 = pnand %p1251_p3, %p1245_p0 }
   0x9   :  { %1255 = shalt.err (!%p1252_p4)
}
   0xa   :  { %s1259_s27 = smov 128   ;;  %s1260_s28 = smov 8  }
   0xb   :  { %30 = dma.hbm_to_vmem [thread:$0]  %s1561_s3, 4096, %s25_s25, [#allocation3], %s1259_s27, %s1259_s27, %s1260_s28  }
   0xc   :  { %1256 = dma.done.wait [#allocation3], 4096  }
   0xd   :  { %1257 = vsyncadd [#allocation3], 4294963200  ;;  %v1261_v0 = vmov 0   ;;  %vm112_vm0 = vcmask 1044480   ;;  %v41_v3 = vld [vmem:[%s1558_s0] sm:$0xff]  ;;  %v42_v4 = vld [vmem:[%s1558_s0 + $0x8] sm:$0xff] }
   0xe   :  { %151 = vmatprep.mubr.bf16.mxu0 %v1261_v0  ;;  %v1169_v1 = vld [vmem:[%s1559_s1 + $0x4] ss:$8 sps:$4 sm:$0x1f]   ;;  %v1171_v2 = vld [vmem:[%s1559_s1] ss:$8 sps:$4 sm:$0x1f]   ;;  %v57_v6 = vpack.c.bf16 %v42_v4, %v41_v3 }
   0xf   :  { %964 = vmatprep.subr.msk.bf16.mxu0 %vm112_vm0, %v1169_v1  ;;  %v114_v5 = vsel %vm112_vm0, %v1171_v2, 0  ;;  %vm87_vm1 = vcmask 80896   ;;  %v43_v7 = vld [vmem:[%s1558_s0 + $0x10] sm:$0xff]  ;;  %v44_v8 = vld [vmem:[%s1558_s0 + $0x18] sm:$0xff]  ;;  %v1175_v11 = vld [vmem:[#allocation2 + $0x64] ss:$8 sps:$4 sm:$0xff]  }
  0x10   :  { %134 = vmatpush1.bf16.msra.mxu0 %v114_v5  ;;  %v1172_v9 = vld [vmem:[#allocation2 + $0x74] ss:$8 sps:$4 sm:$0xff]   ;;  %v1174_v10 = vld [vmem:[#allocation2 + $0x70] ss:$8 sps:$4 sm:$0xff]   ;;  %v1177_v12 = vld [vmem:[#allocation2 + $0x60] ss:$8 sps:$4 sm:$0xff]   ;;  %v58_v13 = vpack.c.bf16 %v44_v8, %v43_v7 }
  0x11   :  { %484 = vmatprep.subr.bf16.mxu1 %v1172_v9  ;;  %v1178_v14 = vld [vmem:[#allocation2 + $0x54] ss:$8 sps:$4 sm:$0xff]   ;;  %v1180_v15 = vld [vmem:[#allocation2 + $0x50] ss:$8 sps:$4 sm:$0xff]   ;;  %v45_v16 = vld [vmem:[%s1558_s0 + $0x20] sm:$0xff] }
  0x12   :  { %485 = vmatpush1.bf16.msra.mxu1 %v1174_v10  ;;  %v1181_v17 = vld [vmem:[#allocation2 + $0x44] ss:$8 sps:$4 sm:$0xff]   ;;  %v1183_v19 = vld [vmem:[#allocation2 + $0x40] ss:$8 sps:$4 sm:$0xff]   ;;  %v1184_v21 = vld [vmem:[#allocation2 + $0x34] ss:$8 sps:$4 sm:$0xff]   ;;  %v69_v10 = vlaneseq }
  0x13   :  { %965 = vmatmul.mubr.msk.bf16.vlgmr.msra.gmra.mxu0 %vm87_vm1, %v57_v6  ;;  %486 = vmatprep.subr.bf16.mxu1 %v1175_v11  ;;  %v46_v18 = vld [vmem:[%s1558_s0 + $0x28] sm:$0xff]  ;;  %v47_v22 = vld [vmem:[%s1558_s0 + $0x30] sm:$0xff]  ;;  %v48_v24 = vld [vmem:[%s1558_s0 + $0x38] sm:$0xff] }
  0x14   :  { %161 = vmatprep.mubr.bf16.mxu0 %v1261_v0  ;;  %v59_v20 = vpack.c.bf16 %v46_v18, %v45_v16  ;;  %v1186_v23 = vld [vmem:[#allocation2 + $0x30] ss:$8 sps:$4 sm:$0xff]   ;;  %v1187_v25 = vld [vmem:[#allocation2 + $0x24] ss:$8 sps:$4 sm:$0xff]   ;;  %v1189_v26 = vld [vmem:[#allocation2 + $0x20] ss:$8 sps:$4 sm:$0xff]   ;;  %v60_v28 = vpack.c.bf16 %v48_v24, %v47_v22 }
  0x15   :  { %v1190_v27 = vld [vmem:[#allocation2 + $0x14] ss:$8 sps:$4 sm:$0xff]   ;;  %v1192_v29 = vld [vmem:[#allocation2 + $0x10] ss:$8 sps:$4 sm:$0xff]   ;;  %v1193_v30 = vld [vmem:[#allocation2 + $0x4] ss:$8 sps:$4 sm:$0xff]  }
  0x16   :  { %487 = vmatpush1.bf16.msra.mxu1 %v1177_v12  ;;  %v49_v31 = vld [vmem:[%s1558_s0 + $0x40] sm:$0xff]  ;;  %v50_v32 = vld [vmem:[%s1558_s0 + $0x48] sm:$0xff]  ;;  %v1196_v34 = vld [vmem:[#allocation2 + $0xf4] ss:$8 sps:$4 sm:$0xff]   ;;  %v1417_v11 = vshrl.u32 %v69_v10, 7 }
  0x17   :  { %488 = vmatprep.subr.bf16.mxu1 %v1178_v14  ;;  %v1195_v33 = vld [vmem:[#allocation2] ss:$8 sps:$4 sm:$0xff]   ;;  %v61_v35 = vpack.c.bf16 %v50_v32, %v49_v31  ;;  %v1198_v36 = vld [vmem:[#allocation2 + $0xf0] ss:$8 sps:$4 sm:$0xff]   ;;  %v1199_v37 = vld [vmem:[#allocation2 + $0xe4] ss:$8 sps:$4 sm:$0xff]  }
  0x18   :  { %v51_v38 = vld [vmem:[%s1558_s0 + $0x50] sm:$0xff]  ;;  %v52_v39 = vld [vmem:[%s1558_s0 + $0x58] sm:$0xff]  ;;  %v1201_v40 = vld [vmem:[#allocation2 + $0xe0] ss:$8 sps:$4 sm:$0xff]   ;;  %v75_v12 = vsub.s32 1, %v1417_v11 }
  0x19   :  { %v62_v41 = vpack.c.bf16 %v52_v39, %v51_v38  ;;  %v1202_v42 = vld [vmem:[#allocation2 + $0xd4] ss:$8 sps:$4 sm:$0xff]   ;;  %v1204_v43 = vld [vmem:[#allocation2 + $0xd0] ss:$8 sps:$4 sm:$0xff]   ;;  %v1205_v44 = vld [vmem:[#allocation2 + $0xc4] ss:$8 sps:$4 sm:$0xff]  }
  0x1a   :  { %489 = vmatpush1.bf16.msra.mxu1 %v1180_v15  ;;  %v53_v45 = vld [vmem:[%s1558_s0 + $0x60] sm:$0xff]  ;;  %v54_v46 = vld [vmem:[%s1558_s0 + $0x68] sm:$0xff]  ;;  %v1208_v49 = vld [vmem:[#allocation2 + $0xb4] ss:$8 sps:$4 sm:$0xff]  }
  0x1b   :  { %966 = vmatmul.mubr.msk.bf16.gmra.mxu0 %vm87_vm1, %v58_v13  ;;  %490 = vmatprep.subr.bf16.mxu1 %v1181_v17  ;;  %v1207_v47 = vld [vmem:[#allocation2 + $0xc0] ss:$8 sps:$4 sm:$0xff]   ;;  %v63_v48 = vpack.c.bf16 %v54_v46, %v53_v45  ;;  %v1210_v50 = vld [vmem:[#allocation2 + $0xb0] ss:$8 sps:$4 sm:$0xff]   ;;  %v1211_v54 = vld [vmem:[#allocation2 + $0xa4] ss:$8 sps:$4 sm:$0xff]  }
  0x1c   :  { %171 = vmatprep.mubr.bf16.mxu0 %v1261_v0  ;;  %v55_v51 = vld [vmem:[%s1558_s0 + $0x70] sm:$0xff]  ;;  %v56_v52 = vld [vmem:[%s1558_s0 + $0x78] sm:$0xff]  ;;  %v1213_v55 = vld [vmem:[#allocation2 + $0xa0] ss:$8 sps:$4 sm:$0xff]   ;;  %v71_v13 = vsub.s32 0, %v1417_v11 }
  0x1d   :  { %v64_v53 = vpack.c.bf16 %v56_v52, %v55_v51  ;;  %v1214_v56 = vld [vmem:[#allocation2 + $0x94] ss:$8 sps:$4 sm:$0xff]   ;;  %v1216_v57 = vld [vmem:[#allocation2 + $0x90] ss:$8 sps:$4 sm:$0xff]   ;;  %v1217_v58 = vld [vmem:[#allocation2 + $0x84] ss:$8 sps:$4 sm:$0xff]  }
  0x1e   :  { %491 = vmatpush1.bf16.msra.mxu1 %v1183_v19  ;;  %v1219_v59 = vld [vmem:[#allocation2 + $0x80] ss:$8 sps:$4 sm:$0xff]   ;;  %v1220_v60 = vld [vmem:[%s1563_s5 + $0x78] sm:$0xff]   ;;  %v1222_v62 = vld [vmem:[%s1563_s5 + $0x70] sm:$0xff]  }
  0x1f   :  { %492 = vmatprep.subr.bf16.mxu1 %v1184_v21  ;;  %v1221_v61 = vld [vmem:[%s1563_s5 + $0x38] sm:$0xff]   ;;  %1101 = vmatprep.subr.bf16.mxu0 %v1220_v60  ;;  %v1223_v63 = vld [vmem:[%s1563_s5 + $0x30] sm:$0xff]   ;;  %v1225_v1 = vld [vmem:[%s1563_s5 + $0x28] sm:$0xff]  }
  0x20   :  { %1102 = vmatpush3.bf16.msra.mxu0 %v1221_v61  ;;  %v1226_v2 = vld [vmem:[%s1563_s5 + $0x60] sm:$0xff]   ;;  %v1228_v4 = vld [vmem:[%s1563_s5 + $0x58] sm:$0xff]   ;;  %v1230_v6 = vld [vmem:[%s1563_s5 + $0x50] sm:$0xff]  }
  0x21   :  { %1103 = vmatprep.subr.bf16.mxu0 %v1222_v62  ;;  %v1227_v3 = vld [vmem:[%s1563_s5 + $0x20] sm:$0xff]   ;;  %v1229_v5 = vld [vmem:[%s1563_s5 + $0x18] sm:$0xff]   ;;  %v1231_v7 = vld [vmem:[%s1563_s5 + $0x10] sm:$0xff]  }
  0x22   :  { %493 = vmatpush1.bf16.msra.mxu1 %v1186_v23  ;;  %v1232_v8 = vld [vmem:[%s1563_s5 + $0x48] sm:$0xff]   ;;  %v67_v14 = vld [vmem:[%s1560_s2] sm:$0x3] }
  0x23   :  { %967 = vmatmul.mubr.msk.bf16.gmra.mxu0 %vm87_vm1, %v59_v20  ;;  %494 = vmatprep.subr.bf16.mxu1 %v1187_v25  ;;  %v1233_v9 = vld [vmem:[%s1563_s5 + $0x8] sm:$0xff]   ;;  %v1426_v16 = vrot.slane %v67_v14, %v75_v12  ;;  %v1430_v17 = vrot.slane %v67_v14, %v71_v13 }
  0x24   :  { %181 = vmatprep.mubr.bf16.mxu0 %v1261_v0  ;;  %1104 = vmatpush3.bf16.msra.mxu0 %v1223_v63 }
  0x26   :  { %495 = vmatpush1.bf16.msra.mxu1 %v1189_v26 }
  0x27   :  { %496 = vmatprep.subr.bf16.mxu1 %v1190_v27 }
  0x2a   :  { %497 = vmatpush1.bf16.msra.mxu1 %v1192_v29 }
  0x2b   :  { %968 = vmatmul.mubr.msk.bf16.gmra.mxu0 %vm87_vm1, %v60_v28  ;;  %498 = vmatprep.subr.bf16.mxu1 %v1193_v30 }
  0x2c   :  { %191 = vmatprep.mubr.bf16.mxu0 %v1261_v0 }
  0x2e   :  { %499 = vmatpush1.bf16.msra.mxu1 %v1195_v33 }
  0x2f   :  { %500 = vmatprep.subr.bf16.mxu1 %v1196_v34 }
  0x32   :  { %501 = vmatpush2.bf16.msra.mxu1 %v1198_v36 }
  0x33   :  { %969 = vmatmul.mubr.msk.bf16.gmra.mxu0 %vm87_vm1, %v61_v35  ;;  %502 = vmatprep.subr.bf16.mxu1 %v1199_v37 }
  0x34   :  { %201 = vmatprep.mubr.bf16.mxu0 %v1261_v0 }
  0x36   :  { %503 = vmatpush2.bf16.msra.mxu1 %v1201_v40 }
  0x37   :  { %504 = vmatprep.subr.bf16.mxu1 %v1202_v42 }
  0x3a   :  { %505 = vmatpush2.bf16.msra.mxu1 %v1204_v43 }
  0x3b   :  { %970 = vmatmul.mubr.msk.bf16.gmra.mxu0 %vm87_vm1, %v62_v41  ;;  %506 = vmatprep.subr.bf16.mxu1 %v1205_v44 }
  0x3c   :  { %211 = vmatprep.mubr.bf16.mxu0 %v1261_v0 }
  0x3e   :  { %507 = vmatpush2.bf16.msra.mxu1 %v1207_v47 }
  0x3f   :  { %508 = vmatprep.subr.bf16.mxu1 %v1208_v49 }
  0x42   :  { %509 = vmatpush2.bf16.msra.mxu1 %v1210_v50 }
  0x43   :  { %971 = vmatmul.mubr.msk.bf16.gmra.mxu0 %vm87_vm1, %v63_v48  ;;  %510 = vmatprep.subr.bf16.mxu1 %v1211_v54 }
  0x44   :  { %221 = vmatprep.mubr.bf16.mxu0 %v1261_v0  ;;  %v1224_v0 = vld [vmem:[%s1563_s5 + $0x68] sm:$0xff]  }
  0x45   :  { %1105 = vmatprep.subr.bf16.mxu0 %v1224_v0 }
  0x46   :  { %511 = vmatpush2.bf16.msra.mxu1 %v1213_v55  ;;  %1106 = vmatpush3.bf16.msra.mxu0 %v1225_v1 }
  0x47   :  { %512 = vmatprep.subr.bf16.mxu1 %v1214_v56  ;;  %1107 = vmatprep.subr.bf16.mxu0 %v1226_v2 }
  0x4a   :  { %513 = vmatpush2.bf16.msra.mxu1 %v1216_v57  ;;  %1108 = vmatpush3.bf16.msra.mxu0 %v1227_v3 }
  0x4b   :  { %972 = vmatmul.mubr.msk.bf16.gmra.mxu0 %vm87_vm1, %v64_v53  ;;  %514 = vmatprep.subr.bf16.mxu1 %v1217_v58 }
  0x4c   :  { %1109 = vmatprep.subr.bf16.mxu0 %v1228_v4 }
  0x4e   :  { %515 = vmatpush2.bf16.msra.mxu1 %v1219_v59  ;;  %1110 = vmatpush3.bf16.msra.mxu0 %v1229_v5 }
  0x4f   :  { %1111 = vmatprep.subr.bf16.mxu0 %v1230_v6 }
  0x52   :  { %1112 = vmatpush3.bf16.msra.mxu0 %v1231_v7 }
  0x53   :  { %1113 = vmatprep.subr.bf16.mxu0 %v1232_v8 }
  0x56   :  { %1114 = vmatpush3.bf16.msra.mxu0 %v1233_v9 }
  0xd3   :  { %v153_v15 = vpop.f32.mrf.mxu0 }
  0xd4   :  { %v154_v22 = vadd.f32 %v153_v15, %v1430_v17 }
  0xd5   :  { %v155_v18 = vpop.f32.mrf.mxu0 }
  0xd6   :  { %v156_v20 = vadd.f32 %v155_v18, %v1426_v16  ;;  %v232_v29 = vmax.f32 %v154_v22, 0.0 }
  0xd7   :  { %v157_v19 = vpop.f32.mrf.mxu0 }
  0xd8   :  { %v158_v21 = vadd.f32 %v157_v19, %v1430_v17  ;;  %v233_v27 = vmax.f32 %v156_v20, 0.0 }
  0xd9   :  { %v159_v23 = vpop.f32.mrf.mxu0 }
  0xda   :  { %v160_v24 = vadd.f32 %v159_v23, %v1426_v16  ;;  %v234_v25 = vmax.f32 %v158_v21, 0.0 }
  0xdb   :  { %v163_v26 = vpop.f32.mrf.mxu0 }
  0xdc   :  { %v235_v28 = vmax.f32 %v160_v24, 0.0  ;;  %v264_v32 = vpack.c.bf16 %v234_v25, %v232_v29  ;;  %v164_v36 = vadd.f32 %v163_v26, %v1430_v17 }
  0xdd   :  { %v165_v30 = vpop.f32.mrf.mxu0 }
  0xde   :  { %v265_v31 = vpack.c.bf16 %v235_v28, %v233_v27  ;;  %v166_v34 = vadd.f32 %v165_v30, %v1426_v16  ;;  %v236_v43 = vmax.f32 %v164_v36, 0.0 }
  0xdf   :  { %v167_v33 = vpop.f32.mrf.mxu0 }
  0xe0   :  { %v168_v35 = vadd.f32 %v167_v33, %v1430_v17  ;;  %516 = vmatprep.mubr.bf16.mxu1 %v265_v31  ;;  %v237_v41 = vmax.f32 %v166_v34, 0.0 }
  0xe1   :  { %v169_v37 = vpop.f32.mrf.mxu0  ;;  %517 = vmatmul.mubr.bf16.vlgmr.msra.gmra.mxu1 %v264_v32 }
  0xe2   :  { %v170_v38 = vadd.f32 %v169_v37, %v1426_v16  ;;  %v238_v39 = vmax.f32 %v168_v35, 0.0 }
  0xe3   :  { %v173_v40 = vpop.f32.mrf.mxu0 }
  0xe4   :  { %v239_v42 = vmax.f32 %v170_v38, 0.0  ;;  %v266_v46 = vpack.c.bf16 %v238_v39, %v236_v43  ;;  %v174_v50 = vadd.f32 %v173_v40, %v1430_v17 }
  0xe5   :  { %v175_v44 = vpop.f32.mrf.mxu0 }
  0xe6   :  { %v267_v45 = vpack.c.bf16 %v239_v42, %v237_v41  ;;  %v176_v48 = vadd.f32 %v175_v44, %v1426_v16  ;;  %v240_v57 = vmax.f32 %v174_v50, 0.0 }
  0xe7   :  { %v177_v47 = vpop.f32.mrf.mxu0 }
  0xe8   :  { %v178_v49 = vadd.f32 %v177_v47, %v1430_v17  ;;  %526 = vmatprep.mubr.bf16.mxu1 %v267_v45  ;;  %v241_v55 = vmax.f32 %v176_v48, 0.0 }
  0xe9   :  { %v179_v51 = vpop.f32.mrf.mxu0  ;;  %527 = vmatmul.mubr.bf16.gmra.mxu1 %v266_v46 }
  0xea   :  { %v180_v52 = vadd.f32 %v179_v51, %v1426_v16  ;;  %v242_v53 = vmax.f32 %v178_v49, 0.0 }
  0xeb   :  { %v183_v54 = vpop.f32.mrf.mxu0 }
  0xec   :  { %v243_v56 = vmax.f32 %v180_v52, 0.0  ;;  %v268_v60 = vpack.c.bf16 %v242_v53, %v240_v57  ;;  %v184_v0 = vadd.f32 %v183_v54, %v1430_v17 }
  0xed   :  { %v185_v58 = vpop.f32.mrf.mxu0 }
  0xee   :  { %v269_v59 = vpack.c.bf16 %v243_v56, %v241_v55  ;;  %v186_v62 = vadd.f32 %v185_v58, %v1426_v16  ;;  %v244_v7 = vmax.f32 %v184_v0, 0.0 }
  0xef   :  { %v187_v61 = vpop.f32.mrf.mxu0 }
  0xf0   :  { %v188_v63 = vadd.f32 %v187_v61, %v1430_v17  ;;  %536 = vmatprep.mubr.bf16.mxu1 %v269_v59  ;;  %v245_v5 = vmax.f32 %v186_v62, 0.0 }
  0xf1   :  { %v189_v1 = vpop.f32.mrf.mxu0  ;;  %537 = vmatmul.mubr.bf16.gmra.mxu1 %v268_v60 }
  0xf2   :  { %v190_v2 = vadd.f32 %v189_v1, %v1426_v16  ;;  %v246_v3 = vmax.f32 %v188_v63, 0.0 }
  0xf3   :  { %v193_v4 = vpop.f32.mrf.mxu0 }
  0xf4   :  { %v247_v6 = vmax.f32 %v190_v2, 0.0  ;;  %v270_v10 = vpack.c.bf16 %v246_v3, %v244_v7  ;;  %v194_v19 = vadd.f32 %v193_v4, %v1430_v17 }
  0xf5   :  { %v195_v8 = vpop.f32.mrf.mxu0 }
  0xf6   :  { %v271_v9 = vpack.c.bf16 %v247_v6, %v245_v5  ;;  %v196_v15 = vadd.f32 %v195_v8, %v1426_v16  ;;  %v248_v26 = vmax.f32 %v194_v19, 0.0  ;;  %v1234_v6 = vld [vmem:[%s1563_s5 + $0x40] sm:$0xff]  }
  0xf7   :  { %v197_v14 = vpop.f32.mrf.mxu0  ;;  %1115 = vmatprep.subr.bf16.mxu0 %v1234_v6 }
  0xf8   :  { %v198_v18 = vadd.f32 %v197_v14, %v1430_v17  ;;  %546 = vmatprep.mubr.bf16.mxu1 %v271_v9  ;;  %v249_v24 = vmax.f32 %v196_v15, 0.0 }
  0xf9   :  { %v199_v20 = vpop.f32.mrf.mxu0  ;;  %547 = vmatmul.mubr.bf16.gmra.mxu1 %v270_v10 }
  0xfa   :  { %v200_v21 = vadd.f32 %v199_v20, %v1426_v16  ;;  %v250_v22 = vmax.f32 %v198_v18, 0.0 }
  0xfb   :  { %v203_v23 = vpop.f32.mrf.mxu0 }
  0xfc   :  { %v251_v25 = vmax.f32 %v200_v21, 0.0  ;;  %v272_v29 = vpack.c.bf16 %v250_v22, %v248_v26  ;;  %v204_v33 = vadd.f32 %v203_v23, %v1430_v17 }
  0xfd   :  { %v205_v27 = vpop.f32.mrf.mxu0 }
  0xfe   :  { %v273_v28 = vpack.c.bf16 %v251_v25, %v249_v24  ;;  %v206_v31 = vadd.f32 %v205_v27, %v1426_v16  ;;  %v252_v40 = vmax.f32 %v204_v33, 0.0 }
  0xff   :  { %v207_v30 = vpop.f32.mrf.mxu0 }
 0x100   :  { %v208_v32 = vadd.f32 %v207_v30, %v1430_v17  ;;  %556 = vmatprep.mubr.bf16.mxu1 %v273_v28  ;;  %v253_v38 = vmax.f32 %v206_v31, 0.0 }
 0x101   :  { %v209_v34 = vpop.f32.mrf.mxu0  ;;  %557 = vmatmul.mubr.bf16.gmra.mxu1 %v272_v29 }
 0x102   :  { %v210_v35 = vadd.f32 %v209_v34, %v1426_v16  ;;  %v254_v36 = vmax.f32 %v208_v32, 0.0 }
 0x103   :  { %v213_v37 = vpop.f32.mrf.mxu0 }
 0x104   :  { %v255_v39 = vmax.f32 %v210_v35, 0.0  ;;  %v274_v43 = vpack.c.bf16 %v254_v36, %v252_v40  ;;  %v214_v47 = vadd.f32 %v213_v37, %v1430_v17 }
 0x105   :  { %v215_v41 = vpop.f32.mrf.mxu0 }
 0x106   :  { %v275_v42 = vpack.c.bf16 %v255_v39, %v253_v38  ;;  %v216_v45 = vadd.f32 %v215_v41, %v1426_v16  ;;  %v256_v54 = vmax.f32 %v214_v47, 0.0 }
 0x107   :  { %v217_v44 = vpop.f32.mrf.mxu0 }
 0x108   :  { %v218_v46 = vadd.f32 %v217_v44, %v1430_v17  ;;  %566 = vmatprep.mubr.bf16.mxu1 %v275_v42  ;;  %v257_v52 = vmax.f32 %v216_v45, 0.0 }
 0x109   :  { %v219_v48 = vpop.f32.mrf.mxu0  ;;  %567 = vmatmul.mubr.bf16.gmra.mxu1 %v274_v43 }
 0x10a   :  { %v220_v49 = vadd.f32 %v219_v48, %v1426_v16  ;;  %v258_v50 = vmax.f32 %v218_v46, 0.0 }
 0x10b   :  { %v223_v51 = vpop.f32.mrf.mxu0 }
 0x10c   :  { %v259_v53 = vmax.f32 %v220_v49, 0.0  ;;  %v276_v57 = vpack.c.bf16 %v258_v50, %v256_v54  ;;  %v224_v61 = vadd.f32 %v223_v51, %v1430_v17 }
 0x10d   :  { %v225_v55 = vpop.f32.mrf.mxu0 }
 0x10e   :  { %v277_v56 = vpack.c.bf16 %v259_v53, %v257_v52  ;;  %v226_v59 = vadd.f32 %v225_v55, %v1426_v16  ;;  %v260_v3 = vmax.f32 %v224_v61, 0.0 }
 0x10f   :  { %v227_v58 = vpop.f32.mrf.mxu0 }
 0x110   :  { %v228_v60 = vadd.f32 %v227_v58, %v1430_v17  ;;  %576 = vmatprep.mubr.bf16.mxu1 %v277_v56  ;;  %v261_v1 = vmax.f32 %v226_v59, 0.0  ;;  %v1235_v17 = vld [vmem:[%s1563_s5] sm:$0xff]  }
 0x111   :  { %v229_v62 = vpop.f32.mrf.mxu0  ;;  %577 = vmatmul.mubr.bf16.gmra.mxu1 %v276_v57  ;;  %1116 = vmatpush3.bf16.msra.mxu0 %v1235_v17 }
 0x112   :  { %v230_v63 = vadd.f32 %v229_v62, %v1426_v16  ;;  %v262_v0 = vmax.f32 %v228_v60, 0.0  ;;  %v312_v16 = vld [vmem:[%s1562_s4] sm:$0x3] }
 0x113   :  { %v1475_v8 = vrot.slane %v312_v16, %v75_v12  ;;  %v1479_v9 = vrot.slane %v312_v16, %v71_v13 }
 0x114   :  { %v263_v2 = vmax.f32 %v230_v63, 0.0  ;;  %v278_v5 = vpack.c.bf16 %v262_v0, %v260_v3 }
 0x116   :  { %v279_v4 = vpack.c.bf16 %v263_v2, %v261_v1 }
 0x118   :  { %586 = vmatprep.mubr.bf16.mxu1 %v279_v4 }
 0x119   :  { %587 = vmatmul.mubr.bf16.gmra.mxu1 %v278_v5 }
 0x1a1   :  { %v518_v7 = vpop.f32.mrf.mxu1 }
 0x1a2   :  { %v519_v19 = vadd.f32 %v518_v7, %v1479_v9 }
 0x1a3   :  { %v520_v10 = vpop.f32.mrf.mxu1 }
 0x1a4   :  { %v521_v15 = vadd.f32 %v520_v10, %v1475_v8  ;;  %v597_v25 = vmax.f32 %v519_v19, 0.0 }
 0x1a5   :  { %v522_v14 = vpop.f32.mrf.mxu1 }
 0x1a6   :  { %v523_v18 = vadd.f32 %v522_v14, %v1479_v9  ;;  %v598_v24 = vmax.f32 %v521_v15, 0.0 }
 0x1a7   :  { %v524_v20 = vpop.f32.mrf.mxu1 }
 0x1a8   :  { %v525_v21 = vadd.f32 %v524_v20, %v1475_v8  ;;  %v599_v22 = vmax.f32 %v523_v18, 0.0 }
 0x1a9   :  { %v528_v23 = vpop.f32.mrf.mxu1 }
 0x1aa   :  { %v600_v12 = vmax.f32 %v525_v21, 0.0  ;;  %v629_v13 = vpack.c.bf16 %v599_v22, %v597_v25  ;;  %v529_v30 = vadd.f32 %v528_v23, %v1479_v9 }
 0x1ab   :  { %v530_v26 = vpop.f32.mrf.mxu1 }
 0x1ac   :  { %v630_v11 = vpack.c.bf16 %v600_v12, %v598_v24  ;;  %v531_v28 = vadd.f32 %v530_v26, %v1475_v8  ;;  %v601_v37 = vmax.f32 %v529_v30, 0.0 }
 0x1ad   :  { %v532_v27 = vpop.f32.mrf.mxu1 }
 0x1ae   :  { %v533_v29 = vadd.f32 %v532_v27, %v1479_v9  ;;  %812 = vmatprep.mubr.bf16.mxu0 %v630_v11  ;;  %v602_v35 = vmax.f32 %v531_v28, 0.0 }
 0x1af   :  { %v534_v31 = vpop.f32.mrf.mxu1  ;;  %813 = vmatmul.mubr.bf16.vlgmr.msra.gmra.mxu0 %v629_v13 }
 0x1b0   :  { %v535_v32 = vadd.f32 %v534_v31, %v1475_v8  ;;  %v603_v33 = vmax.f32 %v533_v29, 0.0 }
 0x1b1   :  { %v538_v34 = vpop.f32.mrf.mxu1 }
 0x1b2   :  { %v604_v36 = vmax.f32 %v535_v32, 0.0  ;;  %v631_v40 = vpack.c.bf16 %v603_v33, %v601_v37  ;;  %v539_v44 = vadd.f32 %v538_v34, %v1479_v9 }
 0x1b3   :  { %v540_v38 = vpop.f32.mrf.mxu1 }
 0x1b4   :  { %v632_v39 = vpack.c.bf16 %v604_v36, %v602_v35  ;;  %v541_v42 = vadd.f32 %v540_v38, %v1475_v8  ;;  %v605_v51 = vmax.f32 %v539_v44, 0.0 }
 0x1b5   :  { %v542_v41 = vpop.f32.mrf.mxu1 }
 0x1b6   :  { %v543_v43 = vadd.f32 %v542_v41, %v1479_v9  ;;  %820 = vmatprep.mubr.bf16.mxu0 %v632_v39  ;;  %v606_v49 = vmax.f32 %v541_v42, 0.0 }
 0x1b7   :  { %v544_v45 = vpop.f32.mrf.mxu1  ;;  %821 = vmatmul.mubr.bf16.gmra.mxu0 %v631_v40 }
 0x1b8   :  { %v545_v46 = vadd.f32 %v544_v45, %v1475_v8  ;;  %v607_v47 = vmax.f32 %v543_v43, 0.0 }
 0x1b9   :  { %v548_v48 = vpop.f32.mrf.mxu1 }
 0x1ba   :  { %v608_v50 = vmax.f32 %v545_v46, 0.0  ;;  %v633_v54 = vpack.c.bf16 %v607_v47, %v605_v51  ;;  %v549_v58 = vadd.f32 %v548_v48, %v1479_v9 }
 0x1bb   :  { %v550_v52 = vpop.f32.mrf.mxu1 }
 0x1bc   :  { %v634_v53 = vpack.c.bf16 %v608_v50, %v606_v49  ;;  %v551_v56 = vadd.f32 %v550_v52, %v1475_v8  ;;  %v609_v1 = vmax.f32 %v549_v58, 0.0 }
 0x1bd   :  { %v552_v55 = vpop.f32.mrf.mxu1 }
 0x1be   :  { %v553_v57 = vadd.f32 %v552_v55, %v1479_v9  ;;  %828 = vmatprep.mubr.bf16.mxu0 %v634_v53  ;;  %v610_v63 = vmax.f32 %v551_v56, 0.0 }
 0x1bf   :  { %v554_v59 = vpop.f32.mrf.mxu1  ;;  %829 = vmatmul.mubr.bf16.gmra.mxu0 %v633_v54 }
 0x1c0   :  { %v555_v60 = vadd.f32 %v554_v59, %v1475_v8  ;;  %v611_v61 = vmax.f32 %v553_v57, 0.0 }
 0x1c1   :  { %v558_v62 = vpop.f32.mrf.mxu1 }
 0x1c2   :  { %v612_v0 = vmax.f32 %v555_v60, 0.0  ;;  %v635_v4 = vpack.c.bf16 %v611_v61, %v609_v1  ;;  %v559_v16 = vadd.f32 %v558_v62, %v1479_v9 }
 0x1c3   :  { %v560_v2 = vpop.f32.mrf.mxu1 }
 0x1c4   :  { %v636_v3 = vpack.c.bf16 %v612_v0, %v610_v63  ;;  %v561_v6 = vadd.f32 %v560_v2, %v1475_v8  ;;  %v613_v20 = vmax.f32 %v559_v16, 0.0 }
 0x1c5   :  { %v562_v5 = vpop.f32.mrf.mxu1 }
 0x1c6   :  { %v563_v17 = vadd.f32 %v562_v5, %v1479_v9  ;;  %836 = vmatprep.mubr.bf16.mxu0 %v636_v3  ;;  %v614_v18 = vmax.f32 %v561_v6, 0.0 }
 0x1c7   :  { %v564_v7 = vpop.f32.mrf.mxu1  ;;  %837 = vmatmul.mubr.bf16.gmra.mxu0 %v635_v4 }
 0x1c8   :  { %v565_v10 = vadd.f32 %v564_v7, %v1475_v8  ;;  %v615_v14 = vmax.f32 %v563_v17, 0.0 }
 0x1c9   :  { %v568_v15 = vpop.f32.mrf.mxu1 }
 0x1ca   :  { %v616_v19 = vmax.f32 %v565_v10, 0.0  ;;  %v637_v23 = vpack.c.bf16 %v615_v14, %v613_v20  ;;  %v569_v26 = vadd.f32 %v568_v15, %v1479_v9 }
 0x1cb   :  { %v570_v21 = vpop.f32.mrf.mxu1 }
 0x1cc   :  { %v638_v22 = vpack.c.bf16 %v616_v19, %v614_v18  ;;  %v571_v12 = vadd.f32 %v570_v21, %v1475_v8  ;;  %v617_v31 = vmax.f32 %v569_v26, 0.0 }
 0x1cd   :  { %v572_v24 = vpop.f32.mrf.mxu1 }
 0x1ce   :  { %v573_v25 = vadd.f32 %v572_v24, %v1479_v9  ;;  %844 = vmatprep.mubr.bf16.mxu0 %v638_v22  ;;  %v618_v29 = vmax.f32 %v571_v12, 0.0 }
 0x1cf   :  { %v574_v11 = vpop.f32.mrf.mxu1  ;;  %845 = vmatmul.mubr.bf16.gmra.mxu0 %v637_v23 }
 0x1d0   :  { %v575_v13 = vadd.f32 %v574_v11, %v1475_v8  ;;  %v619_v27 = vmax.f32 %v573_v25, 0.0 }
 0x1d1   :  { %v578_v28 = vpop.f32.mrf.mxu1 }
 0x1d2   :  { %v620_v30 = vmax.f32 %v575_v13, 0.0  ;;  %v639_v34 = vpack.c.bf16 %v619_v27, %v617_v31  ;;  %v579_v38 = vadd.f32 %v578_v28, %v1479_v9 }
 0x1d3   :  { %v580_v32 = vpop.f32.mrf.mxu1 }
 0x1d4   :  { %v640_v33 = vpack.c.bf16 %v620_v30, %v618_v29  ;;  %v581_v36 = vadd.f32 %v580_v32, %v1475_v8  ;;  %v621_v45 = vmax.f32 %v579_v38, 0.0 }
 0x1d5   :  { %v582_v35 = vpop.f32.mrf.mxu1 }
 0x1d6   :  { %v583_v37 = vadd.f32 %v582_v35, %v1479_v9  ;;  %852 = vmatprep.mubr.bf16.mxu0 %v640_v33  ;;  %v622_v43 = vmax.f32 %v581_v36, 0.0 }
 0x1d7   :  { %v584_v39 = vpop.f32.mrf.mxu1  ;;  %853 = vmatmul.mubr.bf16.gmra.mxu0 %v639_v34 }
 0x1d8   :  { %v585_v40 = vadd.f32 %v584_v39, %v1475_v8  ;;  %v623_v41 = vmax.f32 %v583_v37, 0.0 }
 0x1d9   :  { %v588_v42 = vpop.f32.mrf.mxu1 }
 0x1da   :  { %v624_v44 = vmax.f32 %v585_v40, 0.0  ;;  %v641_v48 = vpack.c.bf16 %v623_v41, %v621_v45  ;;  %v589_v52 = vadd.f32 %v588_v42, %v1479_v9 }
 0x1db   :  { %v590_v46 = vpop.f32.mrf.mxu1 }
 0x1dc   :  { %v642_v47 = vpack.c.bf16 %v624_v44, %v622_v43  ;;  %v591_v50 = vadd.f32 %v590_v46, %v1475_v8  ;;  %v625_v58 = vmax.f32 %v589_v52, 0.0 }
 0x1dd   :  { %v592_v49 = vpop.f32.mrf.mxu1 }
 0x1de   :  { %v593_v51 = vadd.f32 %v592_v49, %v1479_v9  ;;  %860 = vmatprep.mubr.bf16.mxu0 %v642_v47  ;;  %v626_v56 = vmax.f32 %v591_v50, 0.0  ;;  %v1516_v9 = vld [vmem:[%s1564_s6] ss:$0 sm:$0xff] }
 0x1df   :  { %v594_v53 = vpop.f32.mrf.mxu1  ;;  %861 = vmatmul.mubr.bf16.gmra.mxu0 %v641_v48 }
 0x1e0   :  { %v595_v54 = vadd.f32 %v594_v53, %v1475_v8  ;;  %v627_v55 = vmax.f32 %v593_v51, 0.0 }
 0x1e2   :  { %v628_v57 = vmax.f32 %v595_v54, 0.0  ;;  %v643_v60 = vpack.c.bf16 %v627_v55, %v625_v58 }
 0x1e4   :  { %v644_v59 = vpack.c.bf16 %v628_v57, %v626_v56 }
 0x1e6   :  { %868 = vmatprep.mubr.bf16.mxu0 %v644_v59 }
 0x1e7   :  { %869 = vmatmul.mubr.bf16.gmra.mxu0 %v643_v60 }
 0x26f   :  { %v1117_v61 = vpop.f32.mrf.mxu0 }
 0x271   :  { %v1118_v62 = vpop.f32.mrf.mxu0 }
 0x272   :  { %v1119_v0 = vadd.f32 %v1118_v62, %v1117_v61 }
 0x273   :  { %v1120_v63 = vpop.f32.mrf.mxu0 }
 0x274   :  { %v815_v3 = vadd.f32 %v1119_v0, %v1516_v9 }
 0x275   :  { %v1121_v1 = vpop.f32.mrf.mxu0 }
 0x276   :  { %v1122_v2 = vadd.f32 %v1121_v1, %v1120_v63 }
 0x277   :  { %v1123_v8 = vpop.f32.mrf.mxu0 }
 0x278   :  { %v818_v4 = vadd.f32 %v1122_v2, %v1516_v9 }
 0x279   :  { %v1124_v5 = vpop.f32.mrf.mxu0 }
 0x27a   :  { %v1057_v6 = vpack.c.bf16 %v818_v4, %v815_v3  ;;  %v1125_v16 = vadd.f32 %v1124_v5, %v1123_v8 }
 0x27b   :  { %v1126_v17 = vpop.f32.mrf.mxu0 }
 0x27c   :  { %1058 = vst [vmem:[%s1565_s7] sm:$0xff] %v1057_v6   ;;  %v823_v15 = vadd.f32 %v1125_v16, %v1516_v9 }
 0x27d   :  { %v1127_v7 = vpop.f32.mrf.mxu0 }
 0x27e   :  { %v1128_v10 = vadd.f32 %v1127_v7, %v1126_v17 }
 0x27f   :  { %v1129_v14 = vpop.f32.mrf.mxu0 }
 0x280   :  { %v826_v18 = vadd.f32 %v1128_v10, %v1516_v9 }
 0x281   :  { %v1130_v19 = vpop.f32.mrf.mxu0 }
 0x282   :  { %v1062_v20 = vpack.c.bf16 %v826_v18, %v823_v15  ;;  %v1131_v22 = vadd.f32 %v1130_v19, %v1129_v14 }
 0x283   :  { %v1132_v21 = vpop.f32.mrf.mxu0 }
 0x284   :  { %1094 = vst [vmem:[%s1565_s7 + $0x8] sm:$0xff] %v1062_v20   ;;  %v831_v25 = vadd.f32 %v1131_v22, %v1516_v9 }
 0x285   :  { %v1133_v23 = vpop.f32.mrf.mxu0 }
 0x286   :  { %v1134_v24 = vadd.f32 %v1133_v23, %v1132_v21 }
 0x287   :  { %v1135_v12 = vpop.f32.mrf.mxu0 }
 0x288   :  { %v834_v26 = vadd.f32 %v1134_v24, %v1516_v9 }
 0x289   :  { %v1136_v11 = vpop.f32.mrf.mxu0 }
 0x28a   :  { %v1067_v13 = vpack.c.bf16 %v834_v26, %v831_v25  ;;  %v1137_v28 = vadd.f32 %v1136_v11, %v1135_v12 }
 0x28b   :  { %v1138_v27 = vpop.f32.mrf.mxu0 }
 0x28c   :  { %1095 = vst [vmem:[%s1565_s7 + $0x10] sm:$0xff] %v1067_v13   ;;  %v839_v32 = vadd.f32 %v1137_v28, %v1516_v9 }
 0x28d   :  { %v1139_v29 = vpop.f32.mrf.mxu0 }
 0x28e   :  { %v1140_v30 = vadd.f32 %v1139_v29, %v1138_v27 }
 0x28f   :  { %v1141_v31 = vpop.f32.mrf.mxu0 }
 0x290   :  { %v842_v33 = vadd.f32 %v1140_v30, %v1516_v9 }
 0x291   :  { %v1142_v34 = vpop.f32.mrf.mxu0 }
 0x292   :  { %v1072_v35 = vpack.c.bf16 %v842_v33, %v839_v32  ;;  %v1143_v37 = vadd.f32 %v1142_v34, %v1141_v31 }
 0x293   :  { %v1144_v36 = vpop.f32.mrf.mxu0 }
 0x294   :  { %1096 = vst [vmem:[%s1565_s7 + $0x18] sm:$0xff] %v1072_v35   ;;  %v847_v41 = vadd.f32 %v1143_v37, %v1516_v9 }
 0x295   :  { %v1145_v38 = vpop.f32.mrf.mxu0 }
 0x296   :  { %v1146_v39 = vadd.f32 %v1145_v38, %v1144_v36 }
 0x297   :  { %v1147_v40 = vpop.f32.mrf.mxu0 }
 0x298   :  { %v850_v42 = vadd.f32 %v1146_v39, %v1516_v9 }
 0x299   :  { %v1148_v43 = vpop.f32.mrf.mxu0 }
 0x29a   :  { %v1077_v44 = vpack.c.bf16 %v850_v42, %v847_v41  ;;  %v1149_v46 = vadd.f32 %v1148_v43, %v1147_v40 }
 0x29b   :  { %v1150_v45 = vpop.f32.mrf.mxu0 }
 0x29c   :  { %1097 = vst [vmem:[%s1565_s7 + $0x20] sm:$0xff] %v1077_v44   ;;  %v855_v50 = vadd.f32 %v1149_v46, %v1516_v9 }
 0x29d   :  { %v1151_v47 = vpop.f32.mrf.mxu0 }
 0x29e   :  { %v1152_v48 = vadd.f32 %v1151_v47, %v1150_v45 }
 0x29f   :  { %v1153_v49 = vpop.f32.mrf.mxu0 }
 0x2a0   :  { %v858_v51 = vadd.f32 %v1152_v48, %v1516_v9 }
 0x2a1   :  { %v1154_v52 = vpop.f32.mrf.mxu0 }
 0x2a2   :  { %v1082_v53 = vpack.c.bf16 %v858_v51, %v855_v50  ;;  %v1155_v55 = vadd.f32 %v1154_v52, %v1153_v49 }
 0x2a3   :  { %v1156_v54 = vpop.f32.mrf.mxu0 }
 0x2a4   :  { %1098 = vst [vmem:[%s1565_s7 + $0x28] sm:$0xff] %v1082_v53   ;;  %v863_v59 = vadd.f32 %v1155_v55, %v1516_v9 }
 0x2a5   :  { %v1157_v56 = vpop.f32.mrf.mxu0 }
 0x2a6   :  { %v1158_v57 = vadd.f32 %v1157_v56, %v1156_v54 }
 0x2a7   :  { %v1159_v58 = vpop.f32.mrf.mxu0 }
 0x2a8   :  { %v866_v60 = vadd.f32 %v1158_v57, %v1516_v9 }
 0x2a9   :  { %v1160_v61 = vpop.f32.mrf.mxu0 }
 0x2aa   :  { %v1087_v62 = vpack.c.bf16 %v866_v60, %v863_v59  ;;  %v1161_v0 = vadd.f32 %v1160_v61, %v1159_v58 }
 0x2ab   :  { %v1162_v63 = vpop.f32.mrf.mxu0 }
 0x2ac   :  { %1099 = vst [vmem:[%s1565_s7 + $0x30] sm:$0xff] %v1087_v62   ;;  %v871_v8 = vadd.f32 %v1161_v0, %v1516_v9 }
 0x2ad   :  { %v1163_v1 = vpop.f32.mrf.mxu0 }
 0x2ae   :  { %v1164_v2 = vadd.f32 %v1163_v1, %v1162_v63 }
 0x2b0   :  { %v874_v3 = vadd.f32 %v1164_v2, %v1516_v9 }
 0x2b2   :  { %v1092_v4 = vpack.c.bf16 %v874_v3, %v871_v8 }
 0x2b4   :  { %1100 = vst [vmem:[%s1565_s7 + $0x38] sm:$0xff] %v1092_v4  }
 0x2b5   :  { %961 = vsyncpa [#allocation3], 1 }

</bundles_post_ra>
